<compile_context>
chip_gen: v6e
topology: v6e:2x2x1
jax: 0.10.0
libtpu: 0.0.40
codegen_flags: <defaults>
</compile_context>

<pallas_src>
import numpy as np

import jax
import jax.numpy as jnp
from jax.experimental import pallas as pl
from jax.experimental.pallas import tpu as pltpu


# ----------------------------------------------------------------------------
# Static (shape-only) interpolation tables, built with numpy at trace time.
# ----------------------------------------------------------------------------
def _axis_interp_weights_t(out_size: int, in_size: int) -> np.ndarray:
    """Transposed 1-D linear interp matrix (in_size, out_size), align_corners=True."""
    if in_size == 1:
        return np.ones((1, out_size), np.float32)
    if out_size == 1:
        w = np.zeros((in_size, 1), np.float32)
        w[0, 0] = 1.0
        return w
    pos = np.arange(out_size, dtype=np.float64) * (in_size - 1) / (out_size - 1)
    lo = np.clip(np.floor(pos), 0, in_size - 2).astype(np.int64)
    frac = (pos - lo).astype(np.float32)
    w = np.zeros((in_size, out_size), np.float32)
    cols = np.arange(out_size)
    w[lo, cols] += 1.0 - frac
    w[lo + 1, cols] += frac
    return w


def _axis_lo_hi_frac(out_size: int, in_size: int):
    """lo/hi input indices and frac per output index, align_corners=True."""
    if out_size == 1:
        pos = np.zeros((1,), np.float64)
    else:
        pos = np.arange(out_size, dtype=np.float64) * (in_size - 1) / (out_size - 1)
    if in_size == 1:
        lo = np.zeros((out_size,), np.int32)
        return lo, lo.copy(), np.zeros((out_size,), np.float32)
    lo = np.clip(np.floor(pos), 0, in_size - 2).astype(np.int32)
    hi = (lo + 1).astype(np.int32)
    frac = (pos - lo).astype(np.float32)
    return lo, hi, frac


# ----------------------------------------------------------------------------
# Kernel
# ----------------------------------------------------------------------------
def _make_kernel(cx: int, cs: int, td: int, hwout: int):
    ctot = cx + cs

    def kernel(lo_ref, hi_ref, frac_ref,   # (Dout,) SMEM: depth lo/hi indices + frac
               x_ref,                      # (1, Din, Cx, Hin*Win) VMEM, resident per batch
               khw_ref,                    # (Hin*Win, Hout*Wout) H (x) W Kronecker weights
               skip_ref,                   # (1, Cs, TD*Hout*Wout) auto-pipelined skip block
               out_ref):                   # (1, Ctot, TD*Hout*Wout) output block
        # ---- channel concat: copy the auto-pipelined skip block (lane-dense) ----
        out_ref[0, cx:ctot, :] = skip_ref[0]

        # ---- trilinear upsample of x into channels [0, cx) ----
        base = pl.program_id(1) * td
        for j in range(td):                        # static unroll over this block's depth slices
            dd = base + j
            lo = lo_ref[dd]
            hi = hi_ref[dd]
            f = frac_ref[dd]
            # Depth lerp on the two bracketing input slices (plain leading-dim dynamic index,
            # lane-dense (Cx, Hin*Win) result; tiny f32 VPU work).
            x_lo = x_ref[0, lo].astype(jnp.float32)
            x_hi = x_ref[0, hi].astype(jnp.float32)
            xd = x_lo + f * (x_hi - x_lo)
            # Single MXU matmul against the H (x) W Kronecker weight (no transposes).
            ups = jnp.dot(xd, khw_ref[...], preferred_element_type=jnp.float32)  # (Cx, HWout)
            # Dense, 128-aligned lane store (static offset j*hwout).
            out_ref[0, 0:cx, j * hwout:(j + 1) * hwout] = ups.astype(out_ref.dtype)

    return kernel


# ----------------------------------------------------------------------------
# Wrapper
# ----------------------------------------------------------------------------
def upsample_cat(x: jnp.ndarray, skip: jnp.ndarray,
                 *, vmem_block_budget_bytes: int = 20 * 1024 * 1024) -> jnp.ndarray:
    """Pallas equivalent of UpsampleCat.forward(x, skip). Inputs are NCDHW."""
    n, cx, din, hin, win = x.shape
    n2, cs, dout, hout, wout = skip.shape
    assert n == n2, "batch dims must match"
    assert x.dtype == skip.dtype, "x and skip must share a dtype"
    ctot = cx + cs
    hwin = hin * win
    hwout = hout * wout
    itemsize = x.dtype.itemsize

    # Static interpolation tables.
    lo_d, hi_d, frac_d = _axis_lo_hi_frac(dout, din)
    aht = _axis_interp_weights_t(hout, hin)            # (Hin, Hout)
    awt = _axis_interp_weights_t(wout, win)            # (Win, Wout)
    khw = np.kron(aht, awt).astype(np.float32)         # (Hin*Win, Hout*Wout) Kronecker weight

    # Pick TD = output depth slices per grid step from a VMEM budget
    # (double-buffered out + skip blocks; x + weights are resident).
    # v5e/v6e have 128 MiB VMEM, v7x has 64 MiB -> keep the budget conservative.
    fixed_bytes = 2 * cx * din * hwin * itemsize + 2 * khw.size * 4
    if hwout % 128 != 0:
        td = dout   # keep the block's last dim equal to the full dim when it isn't 128-aligned
        # TODO(synk): pad Hout*Wout to a multiple of 128 to allow depth blocking on odd sizes.
    else:
        td = 1
        for cand in range(2, dout + 1):
            if dout % cand:
                continue
            need = fixed_bytes + 2 * cand * hwout * (ctot + cs) * itemsize
            if need <= vmem_block_budget_bytes:
                td = cand
    ndb = dout // td

    # Lane-dense / depth-leading views (contiguous reshapes are free; the x transpose is one
    # cheap XLA pass over the small low-res tensor and buys a clean lane-dense matmul LHS).
    x_t = jnp.transpose(x.reshape(n, cx, din, hwin), (0, 2, 1, 3))   # (N, Din, Cx, HWin)
    skip_r = skip.reshape(n, cs, dout * hwout)                       # (N, Cs, Dout*HWout)

    lo_j = jnp.asarray(lo_d, dtype=jnp.int32)
    hi_j = jnp.asarray(hi_d, dtype=jnp.int32)
    frac_j = jnp.asarray(frac_d, dtype=jnp.float32)
    khw_j = jnp.asarray(khw)

    flops = int(n * dout * (3 * cx * hwin + 2 * cx * hwin * hwout))
    bytes_accessed = int(itemsize * (n * cx * din * hwin              # x read once per batch
                                     + n * cs * dout * hwout          # skip read
                                     + n * ctot * dout * hwout)       # output write
                         + 4 * hwin * hwout)                          # Kronecker weight

    grid_spec = pltpu.PrefetchScalarGridSpec(
        num_scalar_prefetch=0,
        grid=(n, ndb),
        in_specs=[
            pl.BlockSpec(memory_space=pltpu.MemorySpace.SMEM),                 # lo   (Dout,)
            pl.BlockSpec(memory_space=pltpu.MemorySpace.SMEM),                 # hi   (Dout,)
            pl.BlockSpec(memory_space=pltpu.MemorySpace.SMEM),                 # frac (Dout,)
            pl.BlockSpec((1, din, cx, hwin), lambda b, dblk: (b, 0, 0, 0)),    # x: resident per batch
            pl.BlockSpec((hwin, hwout), lambda b, dblk: (0, 0)),               # Kronecker weight
            pl.BlockSpec((1, cs, td * hwout), lambda b, dblk: (b, 0, dblk)),   # skip: coarse pipelined
        ],
        out_specs=pl.BlockSpec((1, ctot, td * hwout), lambda b, dblk: (b, 0, dblk)),
    )

    out_flat = pl.pallas_call(
        _make_kernel(cx, cs, td, hwout),
        out_shape=jax.ShapeDtypeStruct((n, ctot, dout * hwout), x.dtype),
        grid_spec=grid_spec,
        compiler_params=pltpu.CompilerParams(
            dimension_semantics=("parallel", "parallel"),
            vmem_limit_bytes=48 * 1024 * 1024),
        cost_estimate=pl.CostEstimate(flops=flops, transcendentals=0,
                                      bytes_accessed=bytes_accessed),
    )(lo_j, hi_j, frac_j, x_t, khw_j, skip_r)

    return out_flat.reshape(n, ctot, dout, hout, wout)


# ----------------------------------------------------------------------------
# Reference + test
# ----------------------------------------------------------------------------
def _reference(x, skip):
    """Plain-JAX reference: separable trilinear (align_corners=True) + concat."""
    _, _, din, hin, win = x.shape
    _, _, dout, hout, wout = skip.shape
    lo_d, hi_d, frac_d = _axis_lo_hi_frac(dout, din)
    a_d = np.zeros((dout, din), np.float32)
    rows = np.arange(dout)
    a_d[rows, lo_d] += 1.0 - frac_d
    a_d[rows, hi_d] += frac_d
    a_h = _axis_interp_weights_t(hout, hin).T    # (Hout, Hin)
    a_w = _axis_interp_weights_t(wout, win).T    # (Wout, Win)
    ups = jnp.einsum('ncdhw,Dd,Hh,Ww->ncDHW',
                     x.astype(jnp.float32),
                     jnp.asarray(a_d), jnp.asarray(a_h), jnp.asarray(a_w))
    return jnp.concatenate([ups, skip.astype(jnp.float32)], axis=1)


if __name__ == "__main__":
    key = jax.random.PRNGKey(0)
    kx, ks = jax.random.split(key)

    # Small NCDHW shapes: x is the low-res feature map, skip is the high-res target.
    x = jax.random.normal(kx, (2, 4, 4, 8, 8), dtype=jnp.float32)
    skip = jax.random.normal(ks, (2, 3, 8, 16, 16), dtype=jnp.float32)

    out = upsample_cat(x, skip)
    jax.block_until_ready(out)
    ref = _reference(x, skip)
    assert out.shape == (2, 7, 8, 16, 16), out.shape
    assert jnp.allclose(out, ref, rtol=1e-5, atol=1e-5), "f32 mismatch vs reference"

    # bf16 path (no wrapper up-cast; lerp + matmul accumulate in f32 in-kernel).
    x_bf = x.astype(jnp.bfloat16)
    skip_bf = skip.astype(jnp.bfloat16)
    out_bf = upsample_cat(x_bf, skip_bf)
    jax.block_until_ready(out_bf)
    assert out_bf.dtype == jnp.bfloat16
    ref_bf = _reference(x_bf, skip_bf)
    assert jnp.allclose(out_bf.astype(jnp.float32), ref_bf, rtol=3e-2, atol=3e-2), \
        "bf16 mismatch vs reference"

    print("KERNEL_OK")
</pallas_src>

<mosaic_0001>
module attributes {stable_mosaic.version = 11 : i64} {
  func.func @kernel(%arg0: i32, %arg1: i32, %arg2: memref<8xi32, #tpu.memory_space<smem>>, %arg3: memref<8xi32, #tpu.memory_space<smem>>, %arg4: memref<8xf32, #tpu.memory_space<smem>>, %arg5: memref<1x4x4x64xf32, #tpu.memory_space<vmem>>, %arg6: memref<64x256xf32, #tpu.memory_space<vmem>>, %arg7: memref<1x3x2048xf32, #tpu.memory_space<vmem>>, %arg8: memref<1x7x2048xf32, #tpu.memory_space<vmem>>) attributes {dimension_semantics = [#tpu.dimension_semantics<parallel>, #tpu.dimension_semantics<parallel>], iteration_bounds = array<i64: 2, 1>, scalar_prefetch = 0 : i64, scratch_operands = 0 : i64, tpu.core_type = #tpu.core_type<tc>, window_params = [{transform_indices = @transform_0, window_bounds = array<i64: 8>}, {transform_indices = @transform_1, window_bounds = array<i64: 8>}, {transform_indices = @transform_2, window_bounds = array<i64: 8>}, {transform_indices = @transform_3, window_bounds = array<i64: 1, 4, 4, 64>}, {pipeline_mode = #tpu.pipeline_mode<synchronous>, transform_indices = @transform_4, window_bounds = array<i64: 64, 256>}, {transform_indices = @transform_5, window_bounds = array<i64: 1, 3, 2048>}, {transform_indices = @transform_6, window_bounds = array<i64: 1, 7, 2048>}]} {
    %c0 = arith.constant 0 : index
    %c0_0 = arith.constant 0 : index
    %c0_1 = arith.constant 0 : index
    %0 = vector.load %arg7[%c0, %c0_0, %c0_1] : memref<1x3x2048xf32, #tpu.memory_space<vmem>>, vector<1x3x2048xf32>
    %1 = vector.shape_cast %0 : vector<1x3x2048xf32> to vector<3x2048xf32>
    %c0_2 = arith.constant 0 : index
    %c4 = arith.constant 4 : index
    %c0_3 = arith.constant 0 : index
    %2 = vector.load %arg8[%c0_2, %c4, %c0_3] : memref<1x7x2048xf32, #tpu.memory_space<vmem>>, vector<1x3x2048xf32>
    %3 = vector.shape_cast %2 : vector<1x3x2048xf32> to vector<3x2048xf32>
    %4 = vector.shape_cast %1 : vector<3x2048xf32> to vector<1x3x2048xf32>
    tpu.vector_store %arg8[%c0_2, %c4, %c0_3], %4 {strides = array<i32>} : memref<1x7x2048xf32, #tpu.memory_space<vmem>>, vector<1x3x2048xf32>,
    %c8_i32 = arith.constant 8 : i32
    %5 = arith.muli %arg1, %c8_i32 : i32
    %c0_i32 = arith.constant 0 : i32
    %6 = arith.addi %5, %c0_i32 : i32
    %7 = arith.index_cast %6 : i32 to index
    %8 = memref.load %arg2[%7] : memref<8xi32, #tpu.memory_space<smem>>
    %9 = arith.index_cast %6 : i32 to index
    %10 = memref.load %arg3[%9] : memref<8xi32, #tpu.memory_space<smem>>
    %11 = arith.index_cast %6 : i32 to index
    %12 = memref.load %arg4[%11] : memref<8xf32, #tpu.memory_space<smem>>
    %c0_4 = arith.constant 0 : index
    %13 = arith.index_cast %8 : i32 to index
    %c0_5 = arith.constant 0 : index
    %c0_6 = arith.constant 0 : index
    %14 = vector.load %arg5[%c0_4, %13, %c0_5, %c0_6] : memref<1x4x4x64xf32, #tpu.memory_space<vmem>>, vector<1x1x4x64xf32>
    %15 = vector.shape_cast %14 : vector<1x1x4x64xf32> to vector<4x64xf32>
    %c0_7 = arith.constant 0 : index
    %16 = arith.index_cast %10 : i32 to index
    %c0_8 = arith.constant 0 : index
    %c0_9 = arith.constant 0 : index
    %17 = vector.load %arg5[%c0_7, %16, %c0_8, %c0_9] : memref<1x4x4x64xf32, #tpu.memory_space<vmem>>, vector<1x1x4x64xf32>
    %18 = vector.shape_cast %17 : vector<1x1x4x64xf32> to vector<4x64xf32>
    %19 = arith.subf %18, %15 : vector<4x64xf32>
    %20 = vector.broadcast %12 : f32 to vector<4x64xf32>
    %21 = arith.mulf %20, %19 : vector<4x64xf32>
    %22 = arith.addf %15, %21 : vector<4x64xf32>
    %c0_10 = arith.constant 0 : index
    %c0_11 = arith.constant 0 : index
    %23 = vector.load %arg6[%c0_10, %c0_11] : memref<64x256xf32, #tpu.memory_space<vmem>>, vector<64x256xf32>
    %cst = arith.constant dense<0.000000e+00> : vector<4x256xf32>
    %24 = tpu.matmul %22, %23, %cst {dimension_numbers = #tpu.dot_dimension_numbers<[1], [0], [0], [1], [0, 0, 1, 1], [], []>} : vector<4x64xf32>, vector<64x256xf32>, vector<4x256xf32> -> vector<4x256xf32>
    %c0_12 = arith.constant 0 : index
    %c0_13 = arith.constant 0 : index
    %c0_14 = arith.constant 0 : index
    %25 = vector.load %arg8[%c0_12, %c0_13, %c0_14] : memref<1x7x2048xf32, #tpu.memory_space<vmem>>, vector<1x4x256xf32>
    %26 = vector.shape_cast %25 : vector<1x4x256xf32> to vector<4x256xf32>
    %27 = vector.shape_cast %24 : vector<4x256xf32> to vector<1x4x256xf32>
    tpu.vector_store %arg8[%c0_12, %c0_13, %c0_14], %27 {strides = array<i32>} : memref<1x7x2048xf32, #tpu.memory_space<vmem>>, vector<1x4x256xf32>,
    %c1_i32 = arith.constant 1 : i32
    %28 = arith.addi %5, %c1_i32 : i32
    %29 = arith.index_cast %28 : i32 to index
    %30 = memref.load %arg2[%29] : memref<8xi32, #tpu.memory_space<smem>>
    %31 = arith.index_cast %28 : i32 to index
    %32 = memref.load %arg3[%31] : memref<8xi32, #tpu.memory_space<smem>>
    %33 = arith.index_cast %28 : i32 to index
    %34 = memref.load %arg4[%33] : memref<8xf32, #tpu.memory_space<smem>>
    %c0_15 = arith.constant 0 : index
    %35 = arith.index_cast %30 : i32 to index
    %c0_16 = arith.constant 0 : index
    %c0_17 = arith.constant 0 : index
    %36 = vector.load %arg5[%c0_15, %35, %c0_16, %c0_17] : memref<1x4x4x64xf32, #tpu.memory_space<vmem>>, vector<1x1x4x64xf32>
    %37 = vector.shape_cast %36 : vector<1x1x4x64xf32> to vector<4x64xf32>
    %c0_18 = arith.constant 0 : index
    %38 = arith.index_cast %32 : i32 to index
    %c0_19 = arith.constant 0 : index
    %c0_20 = arith.constant 0 : index
    %39 = vector.load %arg5[%c0_18, %38, %c0_19, %c0_20] : memref<1x4x4x64xf32, #tpu.memory_space<vmem>>, vector<1x1x4x64xf32>
    %40 = vector.shape_cast %39 : vector<1x1x4x64xf32> to vector<4x64xf32>
    %41 = arith.subf %40, %37 : vector<4x64xf32>
    %42 = vector.broadcast %34 : f32 to vector<4x64xf32>
    %43 = arith.mulf %42, %41 : vector<4x64xf32>
    %44 = arith.addf %37, %43 : vector<4x64xf32>
    %c0_21 = arith.constant 0 : index
    %c0_22 = arith.constant 0 : index
    %45 = vector.load %arg6[%c0_21, %c0_22] : memref<64x256xf32, #tpu.memory_space<vmem>>, vector<64x256xf32>
    %cst_23 = arith.constant dense<0.000000e+00> : vector<4x256xf32>
    %46 = tpu.matmul %44, %45, %cst_23 {dimension_numbers = #tpu.dot_dimension_numbers<[1], [0], [0], [1], [0, 0, 1, 1], [], []>} : vector<4x64xf32>, vector<64x256xf32>, vector<4x256xf32> -> vector<4x256xf32>
    %c0_24 = arith.constant 0 : index
    %c0_25 = arith.constant 0 : index
    %c256 = arith.constant 256 : index
    %47 = vector.load %arg8[%c0_24, %c0_25, %c256] : memref<1x7x2048xf32, #tpu.memory_space<vmem>>, vector<1x4x256xf32>
    %48 = vector.shape_cast %47 : vector<1x4x256xf32> to vector<4x256xf32>
    %49 = vector.shape_cast %46 : vector<4x256xf32> to vector<1x4x256xf32>
    tpu.vector_store %arg8[%c0_24, %c0_25, %c256], %49 {strides = array<i32>} : memref<1x7x2048xf32, #tpu.memory_space<vmem>>, vector<1x4x256xf32>,
    %c2_i32 = arith.constant 2 : i32
    %50 = arith.addi %5, %c2_i32 : i32
    %51 = arith.index_cast %50 : i32 to index
    %52 = memref.load %arg2[%51] : memref<8xi32, #tpu.memory_space<smem>>
    %53 = arith.index_cast %50 : i32 to index
    %54 = memref.load %arg3[%53] : memref<8xi32, #tpu.memory_space<smem>>
    %55 = arith.index_cast %50 : i32 to index
    %56 = memref.load %arg4[%55] : memref<8xf32, #tpu.memory_space<smem>>
    %c0_26 = arith.constant 0 : index
    %57 = arith.index_cast %52 : i32 to index
    %c0_27 = arith.constant 0 : index
    %c0_28 = arith.constant 0 : index
    %58 = vector.load %arg5[%c0_26, %57, %c0_27, %c0_28] : memref<1x4x4x64xf32, #tpu.memory_space<vmem>>, vector<1x1x4x64xf32>
    %59 = vector.shape_cast %58 : vector<1x1x4x64xf32> to vector<4x64xf32>
    %c0_29 = arith.constant 0 : index
    %60 = arith.index_cast %54 : i32 to index
    %c0_30 = arith.constant 0 : index
    %c0_31 = arith.constant 0 : index
    %61 = vector.load %arg5[%c0_29, %60, %c0_30, %c0_31] : memref<1x4x4x64xf32, #tpu.memory_space<vmem>>, vector<1x1x4x64xf32>
    %62 = vector.shape_cast %61 : vector<1x1x4x64xf32> to vector<4x64xf32>
    %63 = arith.subf %62, %59 : vector<4x64xf32>
    %64 = vector.broadcast %56 : f32 to vector<4x64xf32>
    %65 = arith.mulf %64, %63 : vector<4x64xf32>
    %66 = arith.addf %59, %65 : vector<4x64xf32>
    %c0_32 = arith.constant 0 : index
    %c0_33 = arith.constant 0 : index
    %67 = vector.load %arg6[%c0_32, %c0_33] : memref<64x256xf32, #tpu.memory_space<vmem>>, vector<64x256xf32>
    %cst_34 = arith.constant dense<0.000000e+00> : vector<4x256xf32>
    %68 = tpu.matmul %66, %67, %cst_34 {dimension_numbers = #tpu.dot_dimension_numbers<[1], [0], [0], [1], [0, 0, 1, 1], [], []>} : vector<4x64xf32>, vector<64x256xf32>, vector<4x256xf32> -> vector<4x256xf32>
    %c0_35 = arith.constant 0 : index
    %c0_36 = arith.constant 0 : index
    %c512 = arith.constant 512 : index
    %69 = vector.load %arg8[%c0_35, %c0_36, %c512] : memref<1x7x2048xf32, #tpu.memory_space<vmem>>, vector<1x4x256xf32>
    %70 = vector.shape_cast %69 : vector<1x4x256xf32> to vector<4x256xf32>
    %71 = vector.shape_cast %68 : vector<4x256xf32> to vector<1x4x256xf32>
    tpu.vector_store %arg8[%c0_35, %c0_36, %c512], %71 {strides = array<i32>} : memref<1x7x2048xf32, #tpu.memory_space<vmem>>, vector<1x4x256xf32>,
    %c3_i32 = arith.constant 3 : i32
    %72 = arith.addi %5, %c3_i32 : i32
    %73 = arith.index_cast %72 : i32 to index
    %74 = memref.load %arg2[%73] : memref<8xi32, #tpu.memory_space<smem>>
    %75 = arith.index_cast %72 : i32 to index
    %76 = memref.load %arg3[%75] : memref<8xi32, #tpu.memory_space<smem>>
    %77 = arith.index_cast %72 : i32 to index
    %78 = memref.load %arg4[%77] : memref<8xf32, #tpu.memory_space<smem>>
    %c0_37 = arith.constant 0 : index
    %79 = arith.index_cast %74 : i32 to index
    %c0_38 = arith.constant 0 : index
    %c0_39 = arith.constant 0 : index
    %80 = vector.load %arg5[%c0_37, %79, %c0_38, %c0_39] : memref<1x4x4x64xf32, #tpu.memory_space<vmem>>, vector<1x1x4x64xf32>
    %81 = vector.shape_cast %80 : vector<1x1x4x64xf32> to vector<4x64xf32>
    %c0_40 = arith.constant 0 : index
    %82 = arith.index_cast %76 : i32 to index
    %c0_41 = arith.constant 0 : index
    %c0_42 = arith.constant 0 : index
    %83 = vector.load %arg5[%c0_40, %82, %c0_41, %c0_42] : memref<1x4x4x64xf32, #tpu.memory_space<vmem>>, vector<1x1x4x64xf32>
    %84 = vector.shape_cast %83 : vector<1x1x4x64xf32> to vector<4x64xf32>
    %85 = arith.subf %84, %81 : vector<4x64xf32>
    %86 = vector.broadcast %78 : f32 to vector<4x64xf32>
    %87 = arith.mulf %86, %85 : vector<4x64xf32>
    %88 = arith.addf %81, %87 : vector<4x64xf32>
    %c0_43 = arith.constant 0 : index
    %c0_44 = arith.constant 0 : index
    %89 = vector.load %arg6[%c0_43, %c0_44] : memref<64x256xf32, #tpu.memory_space<vmem>>, vector<64x256xf32>
    %cst_45 = arith.constant dense<0.000000e+00> : vector<4x256xf32>
    %90 = tpu.matmul %88, %89, %cst_45 {dimension_numbers = #tpu.dot_dimension_numbers<[1], [0], [0], [1], [0, 0, 1, 1], [], []>} : vector<4x64xf32>, vector<64x256xf32>, vector<4x256xf32> -> vector<4x256xf32>
    %c0_46 = arith.constant 0 : index
    %c0_47 = arith.constant 0 : index
    %c768 = arith.constant 768 : index
    %91 = vector.load %arg8[%c0_46, %c0_47, %c768] : memref<1x7x2048xf32, #tpu.memory_space<vmem>>, vector<1x4x256xf32>
    %92 = vector.shape_cast %91 : vector<1x4x256xf32> to vector<4x256xf32>
    %93 = vector.shape_cast %90 : vector<4x256xf32> to vector<1x4x256xf32>
    tpu.vector_store %arg8[%c0_46, %c0_47, %c768], %93 {strides = array<i32>} : memref<1x7x2048xf32, #tpu.memory_space<vmem>>, vector<1x4x256xf32>,
    %c4_i32 = arith.constant 4 : i32
    %94 = arith.addi %5, %c4_i32 : i32
    %95 = arith.index_cast %94 : i32 to index
    %96 = memref.load %arg2[%95] : memref<8xi32, #tpu.memory_space<smem>>
    %97 = arith.index_cast %94 : i32 to index
    %98 = memref.load %arg3[%97] : memref<8xi32, #tpu.memory_space<smem>>
    %99 = arith.index_cast %94 : i32 to index
    %100 = memref.load %arg4[%99] : memref<8xf32, #tpu.memory_space<smem>>
    %c0_48 = arith.constant 0 : index
    %101 = arith.index_cast %96 : i32 to index
    %c0_49 = arith.constant 0 : index
    %c0_50 = arith.constant 0 : index
    %102 = vector.load %arg5[%c0_48, %101, %c0_49, %c0_50] : memref<1x4x4x64xf32, #tpu.memory_space<vmem>>, vector<1x1x4x64xf32>
    %103 = vector.shape_cast %102 : vector<1x1x4x64xf32> to vector<4x64xf32>
    %c0_51 = arith.constant 0 : index
    %104 = arith.index_cast %98 : i32 to index
    %c0_52 = arith.constant 0 : index
    %c0_53 = arith.constant 0 : index
    %105 = vector.load %arg5[%c0_51, %104, %c0_52, %c0_53] : memref<1x4x4x64xf32, #tpu.memory_space<vmem>>, vector<1x1x4x64xf32>
    %106 = vector.shape_cast %105 : vector<1x1x4x64xf32> to vector<4x64xf32>
    %107 = arith.subf %106, %103 : vector<4x64xf32>
    %108 = vector.broadcast %100 : f32 to vector<4x64xf32>
    %109 = arith.mulf %108, %107 : vector<4x64xf32>
    %110 = arith.addf %103, %109 : vector<4x64xf32>
    %c0_54 = arith.constant 0 : index
    %c0_55 = arith.constant 0 : index
    %111 = vector.load %arg6[%c0_54, %c0_55] : memref<64x256xf32, #tpu.memory_space<vmem>>, vector<64x256xf32>
    %cst_56 = arith.constant dense<0.000000e+00> : vector<4x256xf32>
    %112 = tpu.matmul %110, %111, %cst_56 {dimension_numbers = #tpu.dot_dimension_numbers<[1], [0], [0], [1], [0, 0, 1, 1], [], []>} : vector<4x64xf32>, vector<64x256xf32>, vector<4x256xf32> -> vector<4x256xf32>
    %c0_57 = arith.constant 0 : index
    %c0_58 = arith.constant 0 : index
    %c1024 = arith.constant 1024 : index
    %113 = vector.load %arg8[%c0_57, %c0_58, %c1024] : memref<1x7x2048xf32, #tpu.memory_space<vmem>>, vector<1x4x256xf32>
    %114 = vector.shape_cast %113 : vector<1x4x256xf32> to vector<4x256xf32>
    %115 = vector.shape_cast %112 : vector<4x256xf32> to vector<1x4x256xf32>
    tpu.vector_store %arg8[%c0_57, %c0_58, %c1024], %115 {strides = array<i32>} : memref<1x7x2048xf32, #tpu.memory_space<vmem>>, vector<1x4x256xf32>,
    %c5_i32 = arith.constant 5 : i32
    %116 = arith.addi %5, %c5_i32 : i32
    %117 = arith.index_cast %116 : i32 to index
    %118 = memref.load %arg2[%117] : memref<8xi32, #tpu.memory_space<smem>>
    %119 = arith.index_cast %116 : i32 to index
    %120 = memref.load %arg3[%119] : memref<8xi32, #tpu.memory_space<smem>>
    %121 = arith.index_cast %116 : i32 to index
    %122 = memref.load %arg4[%121] : memref<8xf32, #tpu.memory_space<smem>>
    %c0_59 = arith.constant 0 : index
    %123 = arith.index_cast %118 : i32 to index
    %c0_60 = arith.constant 0 : index
    %c0_61 = arith.constant 0 : index
    %124 = vector.load %arg5[%c0_59, %123, %c0_60, %c0_61] : memref<1x4x4x64xf32, #tpu.memory_space<vmem>>, vector<1x1x4x64xf32>
    %125 = vector.shape_cast %124 : vector<1x1x4x64xf32> to vector<4x64xf32>
    %c0_62 = arith.constant 0 : index
    %126 = arith.index_cast %120 : i32 to index
    %c0_63 = arith.constant 0 : index
    %c0_64 = arith.constant 0 : index
    %127 = vector.load %arg5[%c0_62, %126, %c0_63, %c0_64] : memref<1x4x4x64xf32, #tpu.memory_space<vmem>>, vector<1x1x4x64xf32>
    %128 = vector.shape_cast %127 : vector<1x1x4x64xf32> to vector<4x64xf32>
    %129 = arith.subf %128, %125 : vector<4x64xf32>
    %130 = vector.broadcast %122 : f32 to vector<4x64xf32>
    %131 = arith.mulf %130, %129 : vector<4x64xf32>
    %132 = arith.addf %125, %131 : vector<4x64xf32>
    %c0_65 = arith.constant 0 : index
    %c0_66 = arith.constant 0 : index
    %133 = vector.load %arg6[%c0_65, %c0_66] : memref<64x256xf32, #tpu.memory_space<vmem>>, vector<64x256xf32>
    %cst_67 = arith.constant dense<0.000000e+00> : vector<4x256xf32>
    %134 = tpu.matmul %132, %133, %cst_67 {dimension_numbers = #tpu.dot_dimension_numbers<[1], [0], [0], [1], [0, 0, 1, 1], [], []>} : vector<4x64xf32>, vector<64x256xf32>, vector<4x256xf32> -> vector<4x256xf32>
    %c0_68 = arith.constant 0 : index
    %c0_69 = arith.constant 0 : index
    %c1280 = arith.constant 1280 : index
    %135 = vector.load %arg8[%c0_68, %c0_69, %c1280] : memref<1x7x2048xf32, #tpu.memory_space<vmem>>, vector<1x4x256xf32>
    %136 = vector.shape_cast %135 : vector<1x4x256xf32> to vector<4x256xf32>
    %137 = vector.shape_cast %134 : vector<4x256xf32> to vector<1x4x256xf32>
    tpu.vector_store %arg8[%c0_68, %c0_69, %c1280], %137 {strides = array<i32>} : memref<1x7x2048xf32, #tpu.memory_space<vmem>>, vector<1x4x256xf32>,
    %c6_i32 = arith.constant 6 : i32
    %138 = arith.addi %5, %c6_i32 : i32
    %139 = arith.index_cast %138 : i32 to index
    %140 = memref.load %arg2[%139] : memref<8xi32, #tpu.memory_space<smem>>
    %141 = arith.index_cast %138 : i32 to index
    %142 = memref.load %arg3[%141] : memref<8xi32, #tpu.memory_space<smem>>
    %143 = arith.index_cast %138 : i32 to index
    %144 = memref.load %arg4[%143] : memref<8xf32, #tpu.memory_space<smem>>
    %c0_70 = arith.constant 0 : index
    %145 = arith.index_cast %140 : i32 to index
    %c0_71 = arith.constant 0 : index
    %c0_72 = arith.constant 0 : index
    %146 = vector.load %arg5[%c0_70, %145, %c0_71, %c0_72] : memref<1x4x4x64xf32, #tpu.memory_space<vmem>>, vector<1x1x4x64xf32>
    %147 = vector.shape_cast %146 : vector<1x1x4x64xf32> to vector<4x64xf32>
    %c0_73 = arith.constant 0 : index
    %148 = arith.index_cast %142 : i32 to index
    %c0_74 = arith.constant 0 : index
    %c0_75 = arith.constant 0 : index
    %149 = vector.load %arg5[%c0_73, %148, %c0_74, %c0_75] : memref<1x4x4x64xf32, #tpu.memory_space<vmem>>, vector<1x1x4x64xf32>
    %150 = vector.shape_cast %149 : vector<1x1x4x64xf32> to vector<4x64xf32>
    %151 = arith.subf %150, %147 : vector<4x64xf32>
    %152 = vector.broadcast %144 : f32 to vector<4x64xf32>
    %153 = arith.mulf %152, %151 : vector<4x64xf32>
    %154 = arith.addf %147, %153 : vector<4x64xf32>
    %c0_76 = arith.constant 0 : index
    %c0_77 = arith.constant 0 : index
    %155 = vector.load %arg6[%c0_76, %c0_77] : memref<64x256xf32, #tpu.memory_space<vmem>>, vector<64x256xf32>
    %cst_78 = arith.constant dense<0.000000e+00> : vector<4x256xf32>
    %156 = tpu.matmul %154, %155, %cst_78 {dimension_numbers = #tpu.dot_dimension_numbers<[1], [0], [0], [1], [0, 0, 1, 1], [], []>} : vector<4x64xf32>, vector<64x256xf32>, vector<4x256xf32> -> vector<4x256xf32>
    %c0_79 = arith.constant 0 : index
    %c0_80 = arith.constant 0 : index
    %c1536 = arith.constant 1536 : index
    %157 = vector.load %arg8[%c0_79, %c0_80, %c1536] : memref<1x7x2048xf32, #tpu.memory_space<vmem>>, vector<1x4x256xf32>
    %158 = vector.shape_cast %157 : vector<1x4x256xf32> to vector<4x256xf32>
    %159 = vector.shape_cast %156 : vector<4x256xf32> to vector<1x4x256xf32>
    tpu.vector_store %arg8[%c0_79, %c0_80, %c1536], %159 {strides = array<i32>} : memref<1x7x2048xf32, #tpu.memory_space<vmem>>, vector<1x4x256xf32>,
    %c7_i32 = arith.constant 7 : i32
    %160 = arith.addi %5, %c7_i32 : i32
    %161 = arith.index_cast %160 : i32 to index
    %162 = memref.load %arg2[%161] : memref<8xi32, #tpu.memory_space<smem>>
    %163 = arith.index_cast %160 : i32 to index
    %164 = memref.load %arg3[%163] : memref<8xi32, #tpu.memory_space<smem>>
    %165 = arith.index_cast %160 : i32 to index
    %166 = memref.load %arg4[%165] : memref<8xf32, #tpu.memory_space<smem>>
    %c0_81 = arith.constant 0 : index
    %167 = arith.index_cast %162 : i32 to index
    %c0_82 = arith.constant 0 : index
    %c0_83 = arith.constant 0 : index
    %168 = vector.load %arg5[%c0_81, %167, %c0_82, %c0_83] : memref<1x4x4x64xf32, #tpu.memory_space<vmem>>, vector<1x1x4x64xf32>
    %169 = vector.shape_cast %168 : vector<1x1x4x64xf32> to vector<4x64xf32>
    %c0_84 = arith.constant 0 : index
    %170 = arith.index_cast %164 : i32 to index
    %c0_85 = arith.constant 0 : index
    %c0_86 = arith.constant 0 : index
    %171 = vector.load %arg5[%c0_84, %170, %c0_85, %c0_86] : memref<1x4x4x64xf32, #tpu.memory_space<vmem>>, vector<1x1x4x64xf32>
    %172 = vector.shape_cast %171 : vector<1x1x4x64xf32> to vector<4x64xf32>
    %173 = arith.subf %172, %169 : vector<4x64xf32>
    %174 = vector.broadcast %166 : f32 to vector<4x64xf32>
    %175 = arith.mulf %174, %173 : vector<4x64xf32>
    %176 = arith.addf %169, %175 : vector<4x64xf32>
    %c0_87 = arith.constant 0 : index
    %c0_88 = arith.constant 0 : index
    %177 = vector.load %arg6[%c0_87, %c0_88] : memref<64x256xf32, #tpu.memory_space<vmem>>, vector<64x256xf32>
    %cst_89 = arith.constant dense<0.000000e+00> : vector<4x256xf32>
    %178 = tpu.matmul %176, %177, %cst_89 {dimension_numbers = #tpu.dot_dimension_numbers<[1], [0], [0], [1], [0, 0, 1, 1], [], []>} : vector<4x64xf32>, vector<64x256xf32>, vector<4x256xf32> -> vector<4x256xf32>
    %c0_90 = arith.constant 0 : index
    %c0_91 = arith.constant 0 : index
    %c1792 = arith.constant 1792 : index
    %179 = vector.load %arg8[%c0_90, %c0_91, %c1792] : memref<1x7x2048xf32, #tpu.memory_space<vmem>>, vector<1x4x256xf32>
    %180 = vector.shape_cast %179 : vector<1x4x256xf32> to vector<4x256xf32>
    %181 = vector.shape_cast %178 : vector<4x256xf32> to vector<1x4x256xf32>
    tpu.vector_store %arg8[%c0_90, %c0_91, %c1792], %181 {strides = array<i32>} : memref<1x7x2048xf32, #tpu.memory_space<vmem>>, vector<1x4x256xf32>,
    return
  }
  func.func @transform_0(%arg0: i32, %arg1: i32) -> i32 {
    %c0_i32 = arith.constant 0 : i32
    %c0_i32_0 = arith.constant 0 : i32
    return %c0_i32 : i32
  }
  func.func @transform_1(%arg0: i32, %arg1: i32) -> i32 {
    %c0_i32 = arith.constant 0 : i32
    %c0_i32_0 = arith.constant 0 : i32
    return %c0_i32 : i32
  }
  func.func @transform_2(%arg0: i32, %arg1: i32) -> i32 {
    %c0_i32 = arith.constant 0 : i32
    %c0_i32_0 = arith.constant 0 : i32
    return %c0_i32 : i32
  }
  func.func @transform_3(%arg0: i32, %arg1: i32) -> (i32, i32, i32, i32) {
    %c0_i32 = arith.constant 0 : i32
    %c0_i32_0 = arith.constant 0 : i32
    %c0_i32_1 = arith.constant 0 : i32
    %c0_i32_2 = arith.constant 0 : i32
    return %arg0, %c0_i32, %c0_i32_0, %c0_i32_1 : i32, i32, i32, i32
  }
  func.func @transform_4(%arg0: i32, %arg1: i32) -> (i32, i32) {
    %c0_i32 = arith.constant 0 : i32
    %c0_i32_0 = arith.constant 0 : i32
    %c0_i32_1 = arith.constant 0 : i32
    return %c0_i32, %c0_i32_0 : i32, i32
  }
  func.func @transform_5(%arg0: i32, %arg1: i32) -> (i32, i32, i32) {
    %c0_i32 = arith.constant 0 : i32
    %c0_i32_0 = arith.constant 0 : i32
    return %arg0, %c0_i32, %arg1 : i32, i32, i32
  }
  func.func @transform_6(%arg0: i32, %arg1: i32) -> (i32, i32, i32) {
    %c0_i32 = arith.constant 0 : i32
    %c0_i32_0 = arith.constant 0 : i32
    return %arg0, %c0_i32, %arg1 : i32, i32, i32
  }
}

</mosaic_0001>

<bundles_post_ra>
// kernel: tpu_custom_call.1
= control target key start
LH: loop header
LB: loop body
LE: loop exit
PB: predicated region body
PF: predicated region fallthrough
CT: control target
= control target key end

     0   :  { %11 = vsyncpa [#allocation3], 0  ;;  %s2100_s0 = inlined_call_operand.vmem [shape: s32[8], index: 0, kind: input, shape index: {}]   ;;  %s2101_s1 = inlined_call_operand.vmem [shape: s32[8], index: 1, kind: input, shape index: {}]   ;;  %s2102_s2 = inlined_call_operand.vmem [shape: f32[8], index: 2, kind: input, shape index: {}]   ;;  %s2103_s3 = inlined_call_operand.vmem [shape: f32[2,4,4,64], index: 3, kind: input, shape index: {}]   ;;  %s2104_s4 = inlined_call_operand.vmem [shape: f32[64,256], index: 4, kind: input, shape index: {}]   ;;  %s2105_s5 = inlined_call_operand.vmem [shape: f32[2,3,2048], index: 5, kind: input, shape index: {}]   ;;  %s2106_s6 = inlined_call_operand.vmem [shape: f32[2,7,2048], index: 6, kind: output, shape index: {}]  }
   0x1   :  { %12 = vsyncpa [#allocation5], 0  ;;  %s1656_s21 = smov 0   ;;  %s1658_s22 = smov 0  }
   0x2   :  { %s1660_s23 = smov 0  }
   0x3 LB: > { %s225_s26 = sshll.u32 %s2101_s1, 4  ;;  %s1409_s27 = sadd.s32 4294967295, %s1615_s23   ;;  %s1615_s23 = sphi %s1660_s23, %s18_s23   ;;  %s1611_s22 = sphi %s1658_s22, %s2117_s22   ;;  %s1607_s21 = sphi %s1656_s21, %s2116_s21   ;;  %s226_s26 = int_to_ptr.vmem [resolvable:$true] %s225_s26 }
   0x4   : > { %p1411_p0 = scmp.ge.s32.totalorder %s1615_s23, 1  ;;  %p201_p1 = scmp.lt.s32.totalorder %s1615_s23, 3 }
   0x5   : > { %p1677_p2 = scmp.eq.s32.totalorder %s1409_s27, 0  ;;  %s30_s30 = sadd.s32 1, %s1611_s22 }
   0x6   : > { %p1681_p3 = pnand %p1411_p0, %p201_p1  ;;  %s214_s9 = sshll.u32 %s2100_s0, 4  ;;  %s215_s9 = int_to_ptr.vmem [resolvable:$true] %s214_s9 }
   0x7   : > { %s2110_s28 = scalar_select %p1677_p2, 1, 0 }
   0x8   : > { %s2111_s29 = scalar_select %p1681_p3, 1, 0 }
   0x9   : > { %p1488_p4 = pneg %p1681_p3  ;;  %p1697_p6 = scmp.ge.s32.totalorder %s30_s30, 2 }
   0xa   : > { %s236_s14 = sshll.u32 %s2102_s2, 4  ;;  %s1540_s15 = scalar_lea.vmem %s226_s26, 16  ;;  %s237_s14 = int_to_ptr.vmem [resolvable:$true] %s236_s14 }
   0xb   : > { %p1693_p5 = pnand %p1677_p2, %p1488_p4  ;;  %p1541_p7 = scmp.ne.s32.totalorder %s226_s26, %s1540_s15 }
   0xc   : > { %p1548_p11 = scmp.lt.s32.totalorder %s226_s26, %s226_s26  ;;  %p1549_p12 = scmp.lt.s32.totalorder %s1540_s15, %s1540_s15 }
   0xd   : > { %p1542_p8 = pneg %p1693_p5 }
   0xe   : > { %p1550_p13 = por %p1549_p12, %p1548_p11 }
   0xf   : > { %p1543_p9 = pnand %p1542_p8, %p1541_p7 }
  0x11   : > { %p1544_p10 = pneg %p1543_p9 }
  0x13   : > { %p1551_p0 = pnand %p1550_p13, %p1544_p10 }
  0x15   : > { %1554 = shalt.err (!%p1551_p0)
}
  0x16   : > { %s1617_s16 = smov [#allocation4]   ;;  %s2119_s30 = smov (%p1697_p6, %s30_s30), 0 }
  0x17   : > { %1494 = dma.vmem_to_smem (!%p1693_p5), %s226_s26, 16, %s1617_s16, [#allocation5]  }
  0x18   : > { %s1555_s17 = scalar_lea.vmem %s215_s9, 16  ;;  %p1563_p9 = scmp.lt.s32.totalorder %s215_s9, %s215_s9 }
  0x19   : > { %p1556_p1 = scmp.ne.s32.totalorder %s215_s9, %s1555_s17  ;;  %p1564_p2 = scmp.lt.s32.totalorder %s1555_s17, %s1555_s17 }
  0x1b   : > { %p1558_p4 = pnand %p1556_p1, %p1542_p8  ;;  %p1565_p11 = por %p1564_p2, %p1563_p9 }
  0x1d   : > { %p1559_p7 = pneg %p1558_p4 }
  0x1f   : > { %p1566_p10 = pnand %p1565_p11, %p1559_p7 }
  0x21   : > { %1569 = shalt.err (!%p1566_p10)
}
  0x22   : > { %s1618_s18 = smov [#allocation2]   ;;  %s1570_s19 = scalar_lea.vmem %s237_s14, 16 }
  0x23   : > { %1491 = dma.vmem_to_smem (!%p1693_p5), %s215_s9, 16, %s1618_s18, [#allocation3]  }
  0x24   : > { %p1571_p6 = scmp.ne.s32.totalorder %s237_s14, %s1570_s19  ;;  %p1578_p0 = scmp.lt.s32.totalorder %s237_s14, %s237_s14 }
  0x25   : > { %p1579_p1 = scmp.lt.s32.totalorder %s1570_s19, %s1570_s19 }
  0x26   : > { %p1573_p12 = pnand %p1571_p6, %p1542_p8 }
  0x27   : > { %p1580_p4 = por %p1579_p1, %p1578_p0 }
  0x28   : > { %p1574_p13 = pneg %p1573_p12 }
  0x2a   : > { %p1581_p3 = pnand %p1580_p4, %p1574_p13 }
  0x2c   : > { %1584 = shalt.err (!%p1581_p3)
}
  0x2d   : > { %s1619_s20 = smov [#allocation6]   ;;  %p2114_p2 = scmp.ne.s32.totalorder %s2111_s29, 0 }
  0x2e   : > { %1497 = dma.vmem_to_smem (!%p1693_p5), %s237_s14, 16, %s1619_s20, [#allocation5]  }
  0x2f   : > { %273 = sbr.rel (%p2114_p2) target bundleno = 329 (0x149), region = 44  ;;  %p2115_p7 = scmp.ne.s32.totalorder (!%p2114_p2), %s2110_s28, 0 }
  0x34   : > { %1598 = dma.done.wait (%p2115_p7), [#allocation3], 16  }
  0x35   : > { %1600 = vsyncadd (%p2115_p7), [#allocation3], 4294967280 }
  0x36   : > { %1602 = dma.done.wait (%p2115_p7), [#allocation5], 32  }
  0x37   : > { %1604 = vsyncadd (%p2115_p7), [#allocation5], 4294967264 }
  0x38   : > { %287 = sfence }
  0x39   : > { %v1738_v0 = vld [vmem:[%s2104_s4 + $0x78] sm:$0xff]  ;;  %v1743_v1 = vld [vmem:[%s2104_s4 + $0x70] sm:$0xff]  ;;  %v1748_v2 = vld [vmem:[%s2104_s4 + $0x68] sm:$0xff]  ;;  %p325_p3 = scmp.lt.s32.totalorder %s1607_s21, 1  ;;  %s1758_s9 = sld [smem:[#allocation2]]  ;;  %v1620_v36 = vmov 0.0  }
  0x3a   : > { %448 = vmatprep.subr.mxu0 %v1738_v0  ;;  %554 = vmatprep.subr.mxu1 %v1738_v0  ;;  %v1756_v3 = vld [vmem:[%s2104_s4 + $0x60] sm:$0xff]  ;;  %v1765_v4 = vld [vmem:[%s2104_s4 + $0x58] sm:$0xff]  ;;  %v1773_v5 = vld [vmem:[%s2104_s4 + $0x50] sm:$0xff]  ;;  %s1775_s14 = sld [smem:[#allocation4]]  ;;  %vm428_vm0 = vcmask 523264  }
  0x3b   : > { %449 = vmatpush1.msra.mxu0 %v1743_v1  ;;  %555 = vmatpush1.msra.mxu1 %v1743_v1  ;;  %s2121_s21 = smov (!%p325_p3, %s1607_s21), 1  ;;  %v1782_v6 = vld [vmem:[%s2104_s4 + $0x48] sm:$0xff]  ;;  %v1789_v7 = vld [vmem:[%s2104_s4 + $0x40] sm:$0xff]  ;;  %v1794_v8 = vld [vmem:[%s2104_s4 + $0x38] sm:$0xff]  ;;  %s1842_s20 = sld [smem:[#allocation6]] }
  0x3c   : > { %450 = vmatprep.subr.mxu0 %v1748_v2  ;;  %556 = vmatprep.subr.mxu1 %v1748_v2  ;;  %s1473_s17 = sshll.u32 %s2121_s21, 4  ;;  %s1474_s18 = sshll.u32 %s2121_s21, 6  ;;  %v1799_v9 = vld [vmem:[%s2104_s4 + $0x30] sm:$0xff]  ;;  %v1809_v10 = vld [vmem:[%s2104_s4 + $0x28] sm:$0xff]  ;;  %v1835_v24 = vld [vmem:[%s2104_s4 + $0x20] sm:$0xff] }
  0x3d   : > { %451 = vmatpush1.msra.mxu0 %v1756_v3  ;;  %557 = vmatpush1.msra.mxu1 %v1756_v3  ;;  %s338_s28 = scalar_lea.vmem %s2105_s5, %s1474_s18  ;;  %s1475_s11 = sshll.u32 %s2121_s21, 7  ;;  %v1850_v28 = vld [vmem:[%s2104_s4 + $0x18] sm:$0xff]  ;;  %v1862_v29 = vld [vmem:[%s2104_s4 + $0x10] sm:$0xff]  ;;  %v1875_v31 = vld [vmem:[%s2104_s4 + $0x8] sm:$0xff] }
  0x3e   : > { %452 = vmatprep.subr.mxu0 %v1765_v4  ;;  %558 = vmatprep.subr.mxu1 %v1765_v4  ;;  %v350_v11 = vld [vmem:[%s338_s28] sm:$0x77]  ;;  %v351_v12 = vld [vmem:[%s338_s28 + $0x8] sm:$0x77]  ;;  %s1816_s15 = scalar_lea.vmem %s2103_s3, %s1473_s17  ;;  %s1821_s19 = scalar_lea.vmem %s2106_s6, %s1475_s11  ;;  %v352_v13 = vld [vmem:[%s338_s28 + $0x10] sm:$0x77] }
  0x3f   : > { %453 = vmatpush1.msra.mxu0 %v1773_v5  ;;  %559 = vmatpush1.msra.mxu1 %v1773_v5  ;;  %v353_v14 = vld [vmem:[%s338_s28 + $0x18] sm:$0x77]  ;;  %v354_v15 = vld [vmem:[%s338_s28 + $0x20] sm:$0x77]  ;;  %v366_v16 = vcombine.low %v350_v11, %v350_v11  ;;  %v367_v17 = vcombine.low %v351_v12, %v351_v12  ;;  %v355_v18 = vld [vmem:[%s338_s28 + $0x28] sm:$0x77]  ;;  %v368_v21 = vcombine.low %v352_v13, %v352_v13 }
  0x40   : > { %454 = vmatprep.subr.mxu0 %v1782_v6  ;;  %560 = vmatprep.subr.mxu1 %v1782_v6  ;;  %v356_v19 = vld [vmem:[%s338_s28 + $0x30] sm:$0x77]  ;;  %v357_v20 = vld [vmem:[%s338_s28 + $0x38] sm:$0x77]  ;;  %v369_v22 = vcombine.low %v353_v14, %v353_v14  ;;  %v370_v23 = vcombine.low %v354_v15, %v354_v15  ;;  %383 = vst [vmem:[%s1821_s19 + $0x8] sm:$0x70] %v350_v11 }
  0x41   : > { %455 = vmatpush1.msra.mxu0 %v1789_v7  ;;  %561 = vmatpush1.msra.mxu1 %v1789_v7  ;;  %385 = vst [vmem:[%s1821_s19 + $0x18] sm:$0x70] %v351_v12  ;;  %387 = vst [vmem:[%s1821_s19 + $0x28] sm:$0x70] %v352_v13  ;;  %v371_v25 = vcombine.low %v355_v18, %v355_v18  ;;  %v372_v26 = vcombine.low %v356_v19, %v356_v19  ;;  %s1426_s24 = sshll.u32 %s1758_s9, 2  ;;  %s1427_s29 = sshll.u32 %s1775_s14, 2  ;;  %v409_v35 = vstv %s1842_s20 }
  0x42   : > { %389 = vst [vmem:[%s1821_s19 + $0x38] sm:$0x70] %v353_v14  ;;  %391 = vst [vmem:[%s1821_s19 + $0x48] sm:$0x70] %v354_v15  ;;  %456 = vmatprep.subr.mxu0 %v1794_v8  ;;  %562 = vmatprep.subr.mxu1 %v1794_v8  ;;  %v373_v27 = vcombine.low %v357_v20, %v357_v20  ;;  %s403_s27 = scalar_lea.vmem %s1816_s15, %s1426_s24  ;;  %s406_s28 = scalar_lea.vmem %s1816_s15, %s1427_s29  ;;  %v1884_v33 = vld [vmem:[%s2104_s4] sm:$0xff] }
  0x43   : > { %382 = vst [vmem:[%s1821_s19] sm:$0x70] %v366_v16  ;;  %384 = vst [vmem:[%s1821_s19 + $0x10] sm:$0x70] %v367_v17  ;;  %457 = vmatpush1.msra.mxu0 %v1799_v9  ;;  %563 = vmatpush1.msra.mxu1 %v1799_v9  ;;  %v404_v30 = vld [vmem:[%s403_s27] sm:$0xf]  ;;  %s1868_s8 = sld [smem:[#allocation2 + $0x1]] }
  0x44   : > { %393 = vst [vmem:[%s1821_s19 + $0x58] sm:$0x70] %v355_v18  ;;  %395 = vst [vmem:[%s1821_s19 + $0x68] sm:$0x70] %v356_v19  ;;  %458 = vmatprep.subr.mxu0 %v1809_v10  ;;  %564 = vmatprep.subr.mxu1 %v1809_v10  ;;  %v407_v32 = vld [vmem:[%s406_s28] sm:$0xf] }
  0x45   : > { %397 = vst [vmem:[%s1821_s19 + $0x78] sm:$0x70] %v357_v20  ;;  %386 = vst [vmem:[%s1821_s19 + $0x20] sm:$0x70] %v368_v21  ;;  %459 = vmatpush1.msra.mxu0 %v1835_v24  ;;  %565 = vmatpush1.msra.mxu1 %v1835_v24  ;;  %s1877_s11 = sld [smem:[#allocation4 + $0x1]]  ;;  %v408_v34 = vsub.f32 %v407_v32, %v404_v30 }
  0x46   : > { %388 = vst [vmem:[%s1821_s19 + $0x30] sm:$0x70] %v369_v22  ;;  %390 = vst [vmem:[%s1821_s19 + $0x40] sm:$0x70] %v370_v23  ;;  %460 = vmatprep.subr.mxu0 %v1850_v28  ;;  %566 = vmatprep.subr.mxu1 %v1850_v28  ;;  %s1886_s16 = sld [smem:[#allocation6 + $0x1]] }
  0x47   : > { %392 = vst [vmem:[%s1821_s19 + $0x50] sm:$0x70] %v371_v25  ;;  %394 = vst [vmem:[%s1821_s19 + $0x60] sm:$0x70] %v372_v26  ;;  %461 = vmatpush1.msra.mxu0 %v1862_v29  ;;  %567 = vmatpush1.msra.mxu1 %v1862_v29  ;;  %s1890_s18 = sld [smem:[#allocation2 + $0x2]]  ;;  %v410_v37 = vmul.f32 %v409_v35, %v408_v34 }
  0x48   : > { %396 = vst [vmem:[%s1821_s19 + $0x70] sm:$0x70] %v373_v27  ;;  %462 = vmatprep.subr.mxu0 %v1875_v31  ;;  %568 = vmatprep.subr.mxu1 %v1875_v31  ;;  %s1895_s21 = sld [smem:[#allocation4 + $0x2]] }
  0x49   : > { %463 = vmatpush1.msra.mxu0 %v1884_v33  ;;  %496 = vmatprep.mubr.f32.mxu0 %v1620_v36  ;;  %s1899_s17 = sld [smem:[#allocation6 + $0x2]]  ;;  %s1432_s24 = sshll.u32 %s1868_s8, 2  ;;  %v411_v38 = vadd.f32 %v410_v37, %v404_v30 }
  0x4a   : > { %569 = vmatpush1.msra.mxu1 %v1884_v33  ;;  %602 = vmatprep.mubr.f32.mxu1 %v1620_v36  ;;  %s1904_s20 = sld [smem:[#allocation2 + $0x3]]  ;;  %s510_s25 = scalar_lea.vmem %s1816_s15, %s1432_s24 }
  0x4b   : > { %s1433_s26 = sshll.u32 %s1877_s11, 2  ;;  %660 = vmatprep.subr.mxu0 %v1738_v0  ;;  %766 = vmatprep.subr.mxu1 %v1738_v0  ;;  %v511_v39 = vld [vmem:[%s510_s25] sm:$0xf]  ;;  %s1442_s29 = sld [smem:[#allocation4 + $0x3]] }
  0x4c   : > { %s513_s27 = scalar_lea.vmem %s1816_s15, %s1433_s26  ;;  %1428 = vmatmul.mubr.msk.f32.vlgmr.msra.gmra.mxu0 %vm428_vm0, %v411_v38  ;;  %v516_v41 = vstv %s1886_s16  ;;  %s1923_s10 = sld [smem:[#allocation6 + $0x3]] }
  0x4d   : > { %v514_v40 = vld [vmem:[%s513_s27] sm:$0xf]  ;;  %s1438_s9 = sshll.u32 %s1890_s18, 2  ;;  %661 = vmatpush1.msra.mxu0 %v1743_v1  ;;  %708 = vmatprep.mubr.f32.mxu0 %v1620_v36  ;;  %s1932_s16 = sld [smem:[#allocation2 + $0x4]] }
  0x4e   : > { %v515_v42 = vsub.f32 %v514_v40, %v511_v39  ;;  %s616_s7 = scalar_lea.vmem %s1816_s15, %s1438_s9  ;;  %s1439_s28 = sshll.u32 %s1895_s21, 2  ;;  %662 = vmatprep.subr.mxu0 %v1748_v2 }
  0x4f   : > { %v617_v43 = vld [vmem:[%s616_s7] sm:$0xf]  ;;  %s619_s8 = scalar_lea.vmem %s1816_s15, %s1439_s28  ;;  %663 = vmatpush1.msra.mxu0 %v1756_v3  ;;  %v622_v48 = vstv %s1899_s17  ;;  %s1936_s18 = sld [smem:[#allocation4 + $0x4]] }
  0x50   : > { %v517_v44 = vmul.f32 %v516_v41, %v515_v42  ;;  %v620_v45 = vld [vmem:[%s619_s8] sm:$0xf]  ;;  %s1444_s14 = sshll.u32 %s1904_s20, 2  ;;  %664 = vmatprep.subr.mxu0 %v1765_v4  ;;  %s1940_s21 = sld [smem:[#allocation2 + $0x5]] }
  0x51   : > { %665 = vmatpush1.msra.mxu0 %v1773_v5  ;;  %v621_v47 = vsub.f32 %v620_v45, %v617_v43  ;;  %s722_s11 = scalar_lea.vmem %s1816_s15, %s1444_s14  ;;  %s1445_s12 = sshll.u32 %s1442_s29, 2 }
  0x52   : > { %v518_v46 = vadd.f32 %v517_v44, %v511_v39  ;;  %666 = vmatprep.subr.mxu0 %v1782_v6  ;;  %s725_s13 = scalar_lea.vmem %s1816_s15, %s1445_s12  ;;  %v723_v49 = vld [vmem:[%s722_s11] sm:$0xf]  ;;  %s1944_s17 = sld [smem:[#allocation4 + $0x5]]  ;;  %v728_v53 = vstv %s1923_s10 }
  0x53   : > { %667 = vmatpush1.msra.mxu0 %v1789_v7  ;;  %v726_v50 = vld [vmem:[%s725_s13] sm:$0xf]  ;;  %v623_v51 = vmul.f32 %v622_v48, %v621_v47  ;;  %s1450_s24 = sshll.u32 %s1932_s16, 2  ;;  %s1963_s25 = sld [smem:[#allocation6 + $0x4]] }
  0x54   : > { %1434 = vmatmul.mubr.msk.f32.vlgmr.msra.gmra.mxu1 %vm428_vm0, %v518_v46  ;;  %668 = vmatprep.subr.mxu0 %v1794_v8  ;;  %v727_v52 = vsub.f32 %v726_v50, %v723_v49  ;;  %s828_s29 = scalar_lea.vmem %s1816_s15, %s1450_s24  ;;  %s1975_s7 = sld [smem:[#allocation6 + $0x5]] }
  0x55   : > { %767 = vmatpush1.msra.mxu1 %v1743_v1  ;;  %669 = vmatpush1.msra.mxu0 %v1799_v9  ;;  %v624_v54 = vadd.f32 %v623_v51, %v617_v43  ;;  %s1451_s20 = sshll.u32 %s1936_s18, 2  ;;  %v829_v57 = vld [vmem:[%s828_s29] sm:$0xf]  ;;  %s1987_s14 = sld [smem:[#allocation2 + $0x6]] }
  0x56   : > { %768 = vmatprep.subr.mxu1 %v1748_v2  ;;  %670 = vmatprep.subr.mxu0 %v1809_v10  ;;  %v729_v55 = vmul.f32 %v728_v53, %v727_v52  ;;  %s1456_s26 = sshll.u32 %s1940_s21, 2  ;;  %s831_s9 = scalar_lea.vmem %s1816_s15, %s1451_s20 }
  0x57   : > { %769 = vmatpush1.msra.mxu1 %v1756_v3  ;;  %671 = vmatpush1.msra.mxu0 %v1835_v24  ;;  %s934_s28 = scalar_lea.vmem %s1816_s15, %s1456_s26  ;;  %v832_v58 = vld [vmem:[%s831_s9] sm:$0xf]  ;;  %s1991_s10 = sld [smem:[#allocation4 + $0x6]] }
  0x58   : > { %770 = vmatprep.subr.mxu1 %v1765_v4  ;;  %672 = vmatprep.subr.mxu0 %v1850_v28  ;;  %s1457_s27 = sshll.u32 %s1944_s17, 2  ;;  %v730_v56 = vadd.f32 %v729_v55, %v723_v49  ;;  %v935_v59 = vld [vmem:[%s934_s28] sm:$0xf]  ;;  %v833_v61 = vsub.f32 %v832_v58, %v829_v57  ;;  %s1996_s11 = sld [smem:[#allocation2 + $0x7]] }
  0x59   : > { %771 = vmatpush1.msra.mxu1 %v1773_v5  ;;  %673 = vmatpush1.msra.mxu0 %v1862_v29  ;;  %s937_s8 = scalar_lea.vmem %s1816_s15, %s1457_s27  ;;  %v834_v62 = vstv %s1963_s25  ;;  %s2000_s12 = sld [smem:[#allocation4 + $0x7]] }
  0x5a   : > { %772 = vmatprep.subr.mxu1 %v1782_v6  ;;  %674 = vmatprep.subr.mxu0 %v1875_v31  ;;  %v938_v60 = vld [vmem:[%s937_s8] sm:$0xf]  ;;  %v940_v11 = vstv %s1975_s7  ;;  %v835_v12 = vmul.f32 %v834_v62, %v833_v61  ;;  %s2025_s17 = sld [smem:[#allocation6 + $0x6]] }
  0x5b   : > { %773 = vmatpush1.msra.mxu1 %v1789_v7  ;;  %675 = vmatpush1.msra.mxu0 %v1884_v33  ;;  %v939_v63 = vsub.f32 %v938_v60, %v935_v59  ;;  %s1462_s13 = sshll.u32 %s1987_s14, 2  ;;  %s2031_s25 = sld [smem:[#allocation6 + $0x7]] }
  0x5c   : > { %774 = vmatprep.subr.mxu1 %v1794_v8  ;;  %814 = vmatprep.mubr.f32.mxu1 %v1620_v36  ;;  %v836_v14 = vadd.f32 %v835_v12, %v829_v57  ;;  %s1040_s24 = scalar_lea.vmem %s1816_s15, %s1462_s13 }
  0x5d   : > { %775 = vmatpush1.msra.mxu1 %v1799_v9  ;;  %1440 = vmatmul.mubr.msk.f32.vlgmr.msra.gmra.mxu0 %vm428_vm0, %v624_v54  ;;  %v941_v13 = vmul.f32 %v940_v11, %v939_v63  ;;  %s1463_s16 = sshll.u32 %s1991_s10, 2  ;;  %v1041_v16 = vld [vmem:[%s1040_s24] sm:$0xf] }
  0x5e   : > { %776 = vmatprep.subr.mxu1 %v1809_v10  ;;  %872 = vmatprep.subr.mxu0 %v1738_v0  ;;  %s1468_s18 = sshll.u32 %s1996_s11, 2  ;;  %s1043_s20 = scalar_lea.vmem %s1816_s15, %s1463_s16 }
  0x5f   : > { %777 = vmatpush1.msra.mxu1 %v1835_v24  ;;  %873 = vmatpush1.msra.mxu0 %v1743_v1  ;;  %v942_v15 = vadd.f32 %v941_v13, %v935_v59  ;;  %s1469_s21 = sshll.u32 %s2000_s12, 2  ;;  %s1146_s26 = scalar_lea.vmem %s1816_s15, %s1468_s18  ;;  %v1044_v17 = vld [vmem:[%s1043_s20] sm:$0xf] }
  0x60   : > { %778 = vmatprep.subr.mxu1 %v1850_v28  ;;  %874 = vmatprep.subr.mxu0 %v1748_v2  ;;  %s1149_s27 = scalar_lea.vmem %s1816_s15, %s1469_s21  ;;  %v1147_v18 = vld [vmem:[%s1146_s26] sm:$0xf] }
  0x61   : > { %779 = vmatpush1.msra.mxu1 %v1862_v29  ;;  %875 = vmatpush1.msra.mxu0 %v1756_v3  ;;  %v1150_v19 = vld [vmem:[%s1149_s27] sm:$0xf]  ;;  %v1152_v20 = vstv %s2031_s25 }
  0x62   : > { %780 = vmatprep.subr.mxu1 %v1875_v31  ;;  %876 = vmatprep.subr.mxu0 %v1765_v4 }
  0x63   : > { %781 = vmatpush1.msra.mxu1 %v1884_v33  ;;  %877 = vmatpush1.msra.mxu0 %v1773_v5 }
  0x64   : > { %1446 = vmatmul.mubr.msk.f32.vlgmr.msra.gmra.mxu1 %vm428_vm0, %v730_v56  ;;  %978 = vmatprep.subr.mxu1 %v1738_v0 }
  0x65   : > { %979 = vmatpush1.msra.mxu1 %v1743_v1  ;;  %878 = vmatprep.subr.mxu0 %v1782_v6 }
  0x66   : > { %980 = vmatprep.subr.mxu1 %v1748_v2  ;;  %879 = vmatpush1.msra.mxu0 %v1789_v7 }
  0x67   : > { %981 = vmatpush1.msra.mxu1 %v1756_v3  ;;  %880 = vmatprep.subr.mxu0 %v1794_v8 }
  0x68   : > { %982 = vmatprep.subr.mxu1 %v1765_v4  ;;  %881 = vmatpush1.msra.mxu0 %v1799_v9 }
  0x69   : > { %983 = vmatpush1.msra.mxu1 %v1773_v5  ;;  %882 = vmatprep.subr.mxu0 %v1809_v10 }
  0x6a   : > { %984 = vmatprep.subr.mxu1 %v1782_v6  ;;  %883 = vmatpush1.msra.mxu0 %v1835_v24 }
  0x6b   : > { %985 = vmatpush1.msra.mxu1 %v1789_v7  ;;  %884 = vmatprep.subr.mxu0 %v1850_v28 }
  0x6c   : > { %986 = vmatprep.subr.mxu1 %v1794_v8  ;;  %885 = vmatpush1.msra.mxu0 %v1862_v29 }
  0x6d   : > { %987 = vmatpush1.msra.mxu1 %v1799_v9  ;;  %886 = vmatprep.subr.mxu0 %v1875_v31 }
  0x6e   : > { %988 = vmatprep.subr.mxu1 %v1809_v10  ;;  %887 = vmatpush1.msra.mxu0 %v1884_v33 }
  0x6f   : > { %989 = vmatpush1.msra.mxu1 %v1835_v24  ;;  %920 = vmatprep.mubr.f32.mxu0 %v1620_v36 }
  0x70   : > { %990 = vmatprep.subr.mxu1 %v1850_v28  ;;  %1026 = vmatprep.mubr.f32.mxu1 %v1620_v36 }
  0x71   : > { %991 = vmatpush1.msra.mxu1 %v1862_v29  ;;  %1452 = vmatmul.mubr.msk.f32.vlgmr.msra.gmra.mxu0 %vm428_vm0, %v836_v14 }
  0x72   : > { %992 = vmatprep.subr.mxu1 %v1875_v31  ;;  %1084 = vmatprep.subr.mxu0 %v1738_v0 }
  0x73   : > { %993 = vmatpush1.msra.mxu1 %v1884_v33  ;;  %1085 = vmatpush1.msra.mxu0 %v1743_v1 }
  0x74   : > { %1458 = vmatmul.mubr.msk.f32.vlgmr.msra.gmra.mxu1 %vm428_vm0, %v942_v15  ;;  %1190 = vmatprep.subr.mxu1 %v1738_v0  ;;  %v1045_v0 = vsub.f32 %v1044_v17, %v1041_v16 }
  0x75   : > { %1191 = vmatpush1.msra.mxu1 %v1743_v1  ;;  %1086 = vmatprep.subr.mxu0 %v1748_v2  ;;  %v1151_v1 = vsub.f32 %v1150_v19, %v1147_v18 }
  0x76   : > { %1192 = vmatprep.subr.mxu1 %v1748_v2  ;;  %1087 = vmatpush1.msra.mxu0 %v1756_v3  ;;  %v1046_v2 = vstv %s2025_s17 }
  0x77   : > { %1193 = vmatpush1.msra.mxu1 %v1756_v3  ;;  %1088 = vmatprep.subr.mxu0 %v1765_v4  ;;  %v1047_v3 = vmul.f32 %v1046_v2, %v1045_v0 }
  0x78   : > { %1194 = vmatprep.subr.mxu1 %v1765_v4  ;;  %1089 = vmatpush1.msra.mxu0 %v1773_v5  ;;  %v1153_v4 = vmul.f32 %v1152_v20, %v1151_v1 }
  0x79   : > { %1195 = vmatpush1.msra.mxu1 %v1773_v5  ;;  %1090 = vmatprep.subr.mxu0 %v1782_v6  ;;  %v1048_v5 = vadd.f32 %v1047_v3, %v1041_v16 }
  0x7a   : > { %1196 = vmatprep.subr.mxu1 %v1782_v6  ;;  %1091 = vmatpush1.msra.mxu0 %v1789_v7  ;;  %v1154_v6 = vadd.f32 %v1153_v4, %v1147_v18 }
  0x7b   : > { %1197 = vmatpush1.msra.mxu1 %v1789_v7  ;;  %1092 = vmatprep.subr.mxu0 %v1794_v8 }
  0x7c   : > { %1198 = vmatprep.subr.mxu1 %v1794_v8  ;;  %1093 = vmatpush1.msra.mxu0 %v1799_v9 }
  0x7d   : > { %1199 = vmatpush1.msra.mxu1 %v1799_v9  ;;  %1094 = vmatprep.subr.mxu0 %v1809_v10 }
  0x7e   : > { %1200 = vmatprep.subr.mxu1 %v1809_v10  ;;  %1095 = vmatpush1.msra.mxu0 %v1835_v24 }
  0x7f   : > { %1201 = vmatpush1.msra.mxu1 %v1835_v24  ;;  %1096 = vmatprep.subr.mxu0 %v1850_v28 }
  0x80   : > { %1202 = vmatprep.subr.mxu1 %v1850_v28  ;;  %1097 = vmatpush1.msra.mxu0 %v1862_v29 }
  0x81   : > { %1203 = vmatpush1.msra.mxu1 %v1862_v29  ;;  %1098 = vmatprep.subr.mxu0 %v1875_v31 }
  0x82   : > { %1204 = vmatprep.subr.mxu1 %v1875_v31  ;;  %1099 = vmatpush1.msra.mxu0 %v1884_v33 }
  0x83   : > { %1132 = vmatprep.mubr.f32.mxu0 %v1620_v36  ;;  %1205 = vmatpush1.msra.mxu1 %v1884_v33 }
  0x84   : > { %1238 = vmatprep.mubr.f32.mxu1 %v1620_v36  ;;  %1464 = vmatmul.mubr.msk.f32.vlgmr.msra.gmra.mxu0 %vm428_vm0, %v1048_v5 }
  0x85   : > { %1470 = vmatmul.mubr.msk.f32.vlgmr.msra.gmra.mxu1 %vm428_vm0, %v1154_v6 }
 0x10c   : > { %v498_v7 = vpop.f32.mrf.mxu0 }
 0x10d   : > { %503 = vst [vmem:[%s1821_s19] sm:$0xf] %v498_v7 }
 0x10e   : > { %v500_v8 = vpop.f32.mrf.mxu0 }
 0x10f   : > { %504 = vst [vmem:[%s1821_s19 + $0x8] sm:$0xf] %v500_v8 }
 0x114   : > { %v604_v9 = vpop.f32.mrf.mxu1 }
 0x115   : > { %609 = vst [vmem:[%s1821_s19 + $0x10] sm:$0xf] %v604_v9 }
 0x116   : > { %v606_v10 = vpop.f32.mrf.mxu1 }
 0x117   : > { %610 = vst [vmem:[%s1821_s19 + $0x18] sm:$0xf] %v606_v10 }
 0x11d   : > { %v710_v21 = vpop.f32.mrf.mxu0 }
 0x11e   : > { %715 = vst [vmem:[%s1821_s19 + $0x20] sm:$0xf] %v710_v21 }
 0x11f   : > { %v712_v22 = vpop.f32.mrf.mxu0 }
 0x120   : > { %716 = vst [vmem:[%s1821_s19 + $0x28] sm:$0xf] %v712_v22 }
 0x124   : > { %v816_v23 = vpop.f32.mrf.mxu1 }
 0x125   : > { %821 = vst [vmem:[%s1821_s19 + $0x30] sm:$0xf] %v816_v23 }
 0x126   : > { %v818_v24 = vpop.f32.mrf.mxu1 }
 0x127   : > { %822 = vst [vmem:[%s1821_s19 + $0x38] sm:$0xf] %v818_v24 }
 0x131   : > { %v922_v25 = vpop.f32.mrf.mxu0 }
 0x132   : > { %927 = vst [vmem:[%s1821_s19 + $0x40] sm:$0xf] %v922_v25 }
 0x133   : > { %v924_v27 = vpop.f32.mrf.mxu0 }
 0x134   : > { %v1028_v26 = vpop.f32.mrf.mxu1  ;;  %928 = vst [vmem:[%s1821_s19 + $0x48] sm:$0xf] %v924_v27 }
 0x135   : > { %1033 = vst [vmem:[%s1821_s19 + $0x50] sm:$0xf] %v1028_v26 }
 0x136   : > { %v1030_v28 = vpop.f32.mrf.mxu1 }
 0x137   : > { %1034 = vst [vmem:[%s1821_s19 + $0x58] sm:$0xf] %v1030_v28 }
 0x144   : > { %v1134_v29 = vpop.f32.mrf.mxu0 }
 0x145   : > { %v1240_v30 = vpop.f32.mrf.mxu1  ;;  %1139 = vst [vmem:[%s1821_s19 + $0x60] sm:$0xf] %v1134_v29 }
 0x146   : > { %1245 = vst [vmem:[%s1821_s19 + $0x70] sm:$0xf] %v1240_v30  ;;  %v1136_v31 = vpop.f32.mrf.mxu0 }
 0x147   : > { %v1242_v32 = vpop.f32.mrf.mxu1  ;;  %1140 = vst [vmem:[%s1821_s19 + $0x68] sm:$0xf] %v1136_v31 }
 0x148   : > { %1246 = vst [vmem:[%s1821_s19 + $0x78] sm:$0xf] %v1242_v32 }
 0x149 PF: > { %s18_s23 = sadd.s32 1, %s1615_s23   ;;  %s2116_s21 = smov %s1611_s22 }
 0x14a   : > { %p15_p5 = scmp.ge.s32.totalorder %s18_s23, 4   ;;  %s2117_s22 = smov %s2119_s30 }
 0x14c   :  { %17 = sbr.rel (!%p15_p5) target bundleno = 3 (0x3), region = 106 }
 0x151   :  { %1277 = vsyncpa [#allocation3], 1 }
 0x152   :  { %1279 = vsyncpa [#allocation3 + $0x1], 1 }
 0x153   :  { %1280 = vsyncpa [#allocation5], 1 }

</bundles_post_ra>
